<compile_context>
chip_gen: v7x
topology: tpu7x:2x2x1
jax: 0.10.0
libtpu: 0.0.40
codegen_flags: <defaults>
</compile_context>

<pallas_src>
import functools

import jax
import jax.numpy as jnp
from jax.experimental import pallas as pl
from jax.experimental.pallas import tpu as pltpu


def _round_up(x: int, m: int) -> int:
    return (x + m - 1) // m * m


def _cdiv(a: int, b: int) -> int:
    return -(-a // b)


@functools.lru_cache(maxsize=None)
def _has_bf16_vpu() -> bool:
    # v6e/v7x have a bf16 VPU path; v5e and older do not (keep f32 epilogue).
    try:
        kind = jax.devices()[0].device_kind.lower()
    except Exception:
        return False
    return not any(v in kind for v in ("v2", "v3", "v4", "v5"))


def _resident_spec(block_shape):
    """Constant-index (resident) block: single-buffered to halve its VMEM cost."""
    try:
        return pl.BlockSpec(block_shape, lambda i: (0, 0),
                            pipeline_mode=pl.Buffered(buffer_count=1))
    except (TypeError, AttributeError):
        # Fallback for BlockSpec without pipeline_mode support.
        return pl.BlockSpec(block_shape, lambda i: (0, 0))


def _pick_batch_tile(B, D, x_itemsize, h_pad, h_chunk):
    """Pick tb by bytes (~4 MiB x block) within a v7x-safe VMEM budget."""
    target_block_bytes = 4 << 20        # amortize ~0.35us/grid-step overhead
    vmem_budget = 40 << 20              # conservative: fits v7x's 64 MiB/TC
    resident = D * h_pad * 2 + 2 * h_pad * 4            # bf16 w1 + f32 b1/w2
    per_row = 2 * D * x_itemsize + 2 * h_chunk * 4 + 8  # x dbl-buf + h chunk + out
    rows_budget = max((vmem_budget - resident) // per_row, 8)
    rows_target = max(target_block_bytes // max(D * x_itemsize, 1), 512)
    tb = min(rows_target, rows_budget, _round_up(B, 8))
    tb = max((tb // 8) * 8, 8)
    # v7x has two TensorCores: make the "parallel" batch axis have >= 2 steps.
    if B >= 16 and _cdiv(B, tb) < 2:
        tb = _round_up(_cdiv(B, 2), 8)
    return tb


def net1_kernel(x_ref, w1_ref, b1_ref, w2_ref, b2_ref, o_ref, *, h_chunk,
                epi_dtype):
    tb = x_ref.shape[0]
    h_pad = w1_ref.shape[1]
    # fc1 input in bf16 for the MXU (no-op if x was already streamed as bf16).
    xb = x_ref[...].astype(jnp.bfloat16)
    acc = jnp.zeros((tb, 1), jnp.float32)
    # Hidden dim in <=h_chunk lane slices: the (tb, h_pad) f32 h never
    # materializes; static Python loop -> fully unrolled at trace time.
    for c0 in range(0, h_pad, h_chunk):
        c1 = min(c0 + h_chunk, h_pad)
        # fc1 on the MXU: bf16 operands, f32 accumulation.
        h = jnp.dot(xb, w1_ref[:, c0:c1], preferred_element_type=jnp.float32)
        # Bias + ReLU epilogue (bf16 on v6e/v7x VPU, f32 on v5e and older).
        h = jnp.maximum(h.astype(epi_dtype) + b1_ref[:, c0:c1].astype(epi_dtype),
                        0.0)
        # Dropout = identity (eval mode).
        # fc2 (out_features == 1): VPU multiply + lane reduction, f32 accumulate.
        prod = h * w2_ref[:, c0:c1].astype(epi_dtype)
        acc = acc + jnp.sum(prod.astype(jnp.float32), axis=-1, keepdims=True)
    o_ref[...] = (acc + b2_ref[0, 0]).astype(o_ref.dtype)


def net1_pack_params(w1, b1, w2, b2):
    """One-time weight prep (nn.Linear layout in; kernel-ready layout out)."""
    H, D = w1.shape
    h_pad = _round_up(H, 128)  # lane-dense hidden dim; padded units are zeros
    w1t = jnp.zeros((D, h_pad), jnp.bfloat16).at[:, :H].set(
        jnp.asarray(w1, jnp.float32).T.astype(jnp.bfloat16))
    b1r = jnp.zeros((1, h_pad), jnp.float32).at[:, :H].set(
        jnp.asarray(b1, jnp.float32)[None, :])
    w2r = jnp.zeros((1, h_pad), jnp.float32).at[:, :H].set(
        jnp.asarray(w2, jnp.float32).reshape(1, H))
    b2s = jnp.asarray(b2, jnp.float32).reshape(1, 1)
    return w1t, b1r, w2r, b2s


@functools.partial(
    jax.jit,
    static_argnames=("tb", "h_chunk", "epilogue_bf16", "vmem_limit_bytes"))
def _net1_pallas(x, w1t, b1r, w2r, b2s, *, tb, h_chunk, epilogue_bf16,
                 vmem_limit_bytes):
    B, D = x.shape
    h_pad = w1t.shape[1]
    epi_dtype = jnp.bfloat16 if epilogue_bf16 else jnp.float32
    kernel = functools.partial(net1_kernel, h_chunk=h_chunk, epi_dtype=epi_dtype)
    return pl.pallas_call(
        kernel,
        out_shape=jax.ShapeDtypeStruct((B, 1), jnp.float32),
        grid=(_cdiv(B, tb),),                                   # ragged last block OK
        in_specs=[
            pl.BlockSpec((tb, D), lambda i: (i, 0)),            # x: streamed
            _resident_spec((D, h_pad)),                         # w1: resident, 1-buf
            _resident_spec((1, h_pad)),                         # b1: resident, 1-buf
            _resident_spec((1, h_pad)),                         # w2: resident, 1-buf
            pl.BlockSpec(memory_space=pltpu.MemorySpace.SMEM),  # b2: scalar
        ],
        out_specs=pl.BlockSpec((tb, 1), lambda i: (i, 0)),
        compiler_params=pltpu.CompilerParams(
            dimension_semantics=("parallel",),  # shard batch across TCs (v7x)
            vmem_limit_bytes=vmem_limit_bytes,
        ),
    )(x, w1t, b1r, w2r, b2s)


def net1_forward(x, params, *, block_rows=None):
    """Fused Net1 forward (eval mode).

    x      : (B, input_dim) float32 or bfloat16
    params : output of net1_pack_params(w1, b1, w2, b2)
    returns (B, 1) float32
    """
    w1t, b1r, w2r, b2s = params
    B, D = x.shape
    if w1t.shape[0] != D:
        raise ValueError("x feature dim does not match packed weights")
    h_pad = w1t.shape[1]
    h_chunk = min(h_pad, 512)

    if block_rows is None:
        tb = _pick_batch_tile(B, D, x.dtype.itemsize, h_pad, h_chunk)
    else:
        tb = max((min(block_rows, _round_up(B, 8)) // 8) * 8, 8)

    # VMEM actually used: streamed x (double-buffered) + out blocks + resident
    # single-buffered weights + per-chunk h intermediate; floor 32 MiB for
    # compiler scratch headroom, cap 64 MiB (v7x physical VMEM per TC).
    resident = D * h_pad * w1t.dtype.itemsize + 2 * h_pad * 4
    working = 2 * tb * D * x.dtype.itemsize + 2 * tb * 4 + 2 * tb * h_chunk * 4
    vmem_limit = int(min(max(int(1.5 * (resident + working)) + (2 << 20),
                             32 << 20), 64 << 20))

    return _net1_pallas(x, w1t, b1r, w2r, b2s, tb=tb, h_chunk=h_chunk,
                        epilogue_bf16=_has_bf16_vpu(),
                        vmem_limit_bytes=vmem_limit)


if __name__ == "__main__":
    key = jax.random.PRNGKey(0)
    kx, kw1, kb1, kw2, kb2, kx2 = jax.random.split(key, 6)

    # Small shapes consistent with Net1(input_dim, neurons1, dropout).
    batch, input_dim, neurons1 = 8, 32, 64
    dropout = 0.5  # identity at inference

    x = jax.random.normal(kx, (batch, input_dim), dtype=jnp.float32)
    # nn.Linear layout: weight = (out, in), bias = (out,)
    w1 = jax.random.normal(kw1, (neurons1, input_dim), dtype=jnp.float32) * 0.1
    b1 = jax.random.normal(kb1, (neurons1,), dtype=jnp.float32) * 0.1
    w2 = jax.random.normal(kw2, (1, neurons1), dtype=jnp.float32) * 0.1
    b2 = jax.random.normal(kb2, (1,), dtype=jnp.float32) * 0.1

    params = net1_pack_params(w1, b1, w2, b2)  # one-time weight prep

    def reference(xx):
        return jnp.maximum(xx @ w1.T + b1, 0.0) @ w2.T + b2

    # Single-tile case (B=8).
    out = jax.block_until_ready(net1_forward(x, params))
    assert out.shape == (batch, 1)
    assert jnp.allclose(out, reference(x), atol=3e-2, rtol=3e-2)

    # Auto-tiled multi-step grid with ragged last block (B=520 -> 2 x 264 rows).
    x2 = jax.random.normal(kx2, (520, input_dim), dtype=jnp.float32)
    out2 = jax.block_until_ready(net1_forward(x2, params))
    assert out2.shape == (520, 1)
    assert jnp.allclose(out2, reference(x2), atol=3e-2, rtol=3e-2)

    # Explicit small tile override: 5-step grid, masked 8-row tail block.
    out3 = jax.block_until_ready(net1_forward(x2, params, block_rows=128))
    assert out3.shape == (520, 1)
    assert jnp.allclose(out3, reference(x2), atol=3e-2, rtol=3e-2)

    # bf16-x fast path: stream x in bf16 (no wrapper-side cast, half the bytes).
    x2_bf16 = x2.astype(jnp.bfloat16)
    out4 = jax.block_until_ready(net1_forward(x2_bf16, params))
    assert out4.shape == (520, 1)
    assert jnp.allclose(out4, reference(x2_bf16.astype(jnp.float32)),
                        atol=3e-2, rtol=3e-2)

    print("KERNEL_OK")
</pallas_src>

<mosaic_0001>
module attributes {stable_mosaic.version = 11 : i64} {
  func.func @net1_kernel(%arg0: i32, %arg1: memref<8x32xf32, #tpu.memory_space<vmem>>, %arg2: memref<32x128xbf16, #tpu.memory_space<vmem>>, %arg3: memref<1x128xf32, #tpu.memory_space<vmem>>, %arg4: memref<1x128xf32, #tpu.memory_space<vmem>>, %arg5: memref<1x1xf32, #tpu.memory_space<smem>>, %arg6: memref<8x1xf32, #tpu.memory_space<vmem>>) attributes {dimension_semantics = [#tpu.dimension_semantics<parallel>], iteration_bounds = array<i64: 1>, scalar_prefetch = 0 : i64, scratch_operands = 0 : i64, tpu.core_type = #tpu.core_type<tc>, window_params = [{transform_indices = @transform_0, window_bounds = array<i64: 8, 32>}, {pipeline_mode = #tpu.pipeline_mode<synchronous>, transform_indices = @transform_1, window_bounds = array<i64: 32, 128>}, {pipeline_mode = #tpu.pipeline_mode<synchronous>, transform_indices = @transform_2, window_bounds = array<i64: 1, 128>}, {pipeline_mode = #tpu.pipeline_mode<synchronous>, transform_indices = @transform_3, window_bounds = array<i64: 1, 128>}, {transform_indices = @transform_4, window_bounds = array<i64: 1, 1>}, {transform_indices = @transform_5, window_bounds = array<i64: 8, 1>}]} {
    %c0 = arith.constant 0 : index
    %c0_0 = arith.constant 0 : index
    %0 = vector.load %arg1[%c0, %c0_0] : memref<8x32xf32, #tpu.memory_space<vmem>>, vector<8x32xf32>
    %1 = arith.truncf %0 : vector<8x32xf32> to vector<8x32xbf16>
    %cst = arith.constant 0.000000e+00 : f32
    %2 = vector.broadcast %cst : f32 to vector<8x1xf32>
    %c0_1 = arith.constant 0 : index
    %c0_2 = arith.constant 0 : index
    %3 = vector.load %arg2[%c0_1, %c0_2] : memref<32x128xbf16, #tpu.memory_space<vmem>>, vector<32x128xbf16>
    %cst_3 = arith.constant dense<0.000000e+00> : vector<8x128xf32>
    %4 = tpu.matmul %1, %3, %cst_3 {dimension_numbers = #tpu.dot_dimension_numbers<[1], [0], [0], [1], [0, 0, 1, 1], [], []>} : vector<8x32xbf16>, vector<32x128xbf16>, vector<8x128xf32> -> vector<8x128xf32>
    %5 = arith.truncf %4 : vector<8x128xf32> to vector<8x128xbf16>
    %c0_4 = arith.constant 0 : index
    %c0_5 = arith.constant 0 : index
    %6 = vector.load %arg3[%c0_4, %c0_5] : memref<1x128xf32, #tpu.memory_space<vmem>>, vector<1x128xf32>
    %7 = arith.truncf %6 : vector<1x128xf32> to vector<1x128xbf16>
    %8 = vector.broadcast %7 : vector<1x128xbf16> to vector<8x128xbf16>
    %9 = arith.addf %5, %8 : vector<8x128xbf16>
    %cst_6 = arith.constant 0.000000e+00 : bf16
    %10 = vector.broadcast %cst_6 : bf16 to vector<8x128xbf16>
    %11 = arith.maximumf %9, %10 : vector<8x128xbf16>
    %c0_7 = arith.constant 0 : index
    %c0_8 = arith.constant 0 : index
    %12 = vector.load %arg4[%c0_7, %c0_8] : memref<1x128xf32, #tpu.memory_space<vmem>>, vector<1x128xf32>
    %13 = arith.truncf %12 : vector<1x128xf32> to vector<1x128xbf16>
    %14 = vector.broadcast %13 : vector<1x128xbf16> to vector<8x128xbf16>
    %15 = arith.mulf %11, %14 : vector<8x128xbf16>
    %16 = arith.extf %15 : vector<8x128xbf16> to vector<8x128xf32>
    %cst_9 = arith.constant dense<0.000000e+00> : vector<8xf32>
    %17 = vector.multi_reduction <add>, %16, %cst_9 [1] : vector<8x128xf32> to vector<8xf32>
    %18 = vector.shape_cast %17 : vector<8xf32> to vector<8x1xf32>
    %19 = arith.addf %2, %18 : vector<8x1xf32>
    %c0_10 = arith.constant 0 : index
    %c0_11 = arith.constant 0 : index
    %20 = memref.load %arg5[%c0_10, %c0_11] : memref<1x1xf32, #tpu.memory_space<smem>>
    %21 = vector.broadcast %20 : f32 to vector<8x1xf32>
    %22 = arith.addf %19, %21 : vector<8x1xf32>
    %c0_12 = arith.constant 0 : index
    %c0_13 = arith.constant 0 : index
    %23 = vector.load %arg6[%c0_12, %c0_13] : memref<8x1xf32, #tpu.memory_space<vmem>>, vector<8x1xf32>
    tpu.vector_store %arg6[%c0_12, %c0_13], %22 {strides = array<i32>} : memref<8x1xf32, #tpu.memory_space<vmem>>, vector<8x1xf32>,
    return
  }
  func.func @transform_0(%arg0: i32) -> (i32, i32) {
    %c0_i32 = arith.constant 0 : i32
    %c0_i32_0 = arith.constant 0 : i32
    return %arg0, %c0_i32 : i32, i32
  }
  func.func @transform_1(%arg0: i32) -> (i32, i32) {
    %c0_i32 = arith.constant 0 : i32
    %c0_i32_0 = arith.constant 0 : i32
    %c0_i32_1 = arith.constant 0 : i32
    return %c0_i32, %c0_i32_0 : i32, i32
  }
  func.func @transform_2(%arg0: i32) -> (i32, i32) {
    %c0_i32 = arith.constant 0 : i32
    %c0_i32_0 = arith.constant 0 : i32
    %c0_i32_1 = arith.constant 0 : i32
    return %c0_i32, %c0_i32_0 : i32, i32
  }
  func.func @transform_3(%arg0: i32) -> (i32, i32) {
    %c0_i32 = arith.constant 0 : i32
    %c0_i32_0 = arith.constant 0 : i32
    %c0_i32_1 = arith.constant 0 : i32
    return %c0_i32, %c0_i32_0 : i32, i32
  }
  func.func @transform_4(%arg0: i32) -> (i32, i32) {
    %c0_i32 = arith.constant 0 : i32
    %c0_i32_0 = arith.constant 0 : i32
    %c0_i32_1 = arith.constant 0 : i32
    return %c0_i32, %c0_i32_0 : i32, i32
  }
  func.func @transform_5(%arg0: i32) -> (i32, i32) {
    %c0_i32 = arith.constant 0 : i32
    %c0_i32_0 = arith.constant 0 : i32
    return %arg0, %c0_i32 : i32, i32
  }
}

</mosaic_0001>

<bundles_post_ra>
// kernel: _net1_pallas.1
= control target key start
LH: loop header
LB: loop body
LE: loop exit
PB: predicated region body
PF: predicated region fallthrough
CT: control target
= control target key end

     0   :  { %11 = vsyncpa [#allocation4], 0  ;;  %s298_s0 = inlined_call_operand.hbm [shape: f32[8,32], index: 0, kind: input, shape index: {}]   ;;  %s299_s1 = inlined_call_operand.hbm [shape: bf16[32,128], index: 1, kind: input, shape index: {}]   ;;  %s300_s2 = inlined_call_operand.vmem [shape: f32[1,128], index: 2, kind: input, shape index: {}]   ;;  %s301_s3 = inlined_call_operand.vmem [shape: f32[1,128], index: 3, kind: input, shape index: {}]   ;;  %s302_s4 = inlined_call_operand.<no memory space> [shape: f32[1,1], index: 4, kind: input, shape index: {}]   ;;  %s303_s5 = inlined_call_operand.vmem [shape: f32[8,1], index: 5, kind: output, shape index: {}]  }
   0x1   :  { %12 = vsyncpa [#allocation6], 0  ;;  %s218_s18 = smov [#allocation3]   ;;  %s219_s20 = smov [#allocation5]  }
   0x2   :  { %s19_s19 = sshll.u32 %s218_s18, 4  ;;  %s28_s21 = sshll.u32 %s219_s20, 4  ;;  %s20_s19 = int_to_ptr.vmem [resolvable:$true] %s19_s19  ;;  %s255_s21 = int_to_ptr.vmem [resolvable:$true] %s28_s21 }
   0x3   :  { %s170_s24 = scalar_lea.hbm %s298_s0, 128 }
   0x4   :  { %p171_p0 = scmp.ne.s32.totalorder %s298_s0, %s170_s24  ;;  %p174_p1 = scmp.lt.u32.totalorder %s170_s24, %s298_s0 }
   0x6   :  { %p176_p2 = pnand %p174_p1, %p171_p0 }
   0x8   :  { %179 = shalt.err (!%p176_p2)
}
   0x9   :  { %s180_s29 = scalar_lea.vmem %s20_s19, 128  ;;  %p185_p4 = scmp.lt.s32.totalorder %s20_s19, %s20_s19 }
   0xa   :  { %p181_p3 = scmp.ne.s32.totalorder %s20_s19, %s180_s29  ;;  %p186_p5 = scmp.lt.s32.totalorder %s180_s29, %s180_s29 }
   0xc   :  { %p187_p6 = por %p186_p5, %p185_p4 }
   0xe   :  { %p188_p7 = pnand %p187_p6, %p181_p3 }
  0x10   :  { %191 = shalt.err (!%p188_p7)
}
  0x11   :  { %22 = dma.hbm_to_vmem [thread:$0]  %s298_s0, 128, %s20_s19, [#allocation4]  }
  0x12   :  { %s192_s9 = scalar_lea.hbm %s299_s1, 256 }
  0x13   :  { %p193_p8 = scmp.ne.s32.totalorder %s299_s1, %s192_s9  ;;  %p196_p9 = scmp.lt.u32.totalorder %s192_s9, %s299_s1 }
  0x15   :  { %p198_p10 = pnand %p196_p9, %p193_p8 }
  0x17   :  { %201 = shalt.err (!%p198_p10)
}
  0x18   :  { %s202_s14 = scalar_lea.vmem %s255_s21, 256  ;;  %p207_p12 = scmp.lt.s32.totalorder %s255_s21, %s255_s21 }
  0x19   :  { %p203_p11 = scmp.ne.s32.totalorder %s255_s21, %s202_s14  ;;  %p208_p13 = scmp.lt.s32.totalorder %s202_s14, %s202_s14 }
  0x1b   :  { %p209_p0 = por %p208_p13, %p207_p12 }
  0x1d   :  { %p210_p1 = pnand %p209_p0, %p203_p11 }
  0x1f   :  { %213 = shalt.err (!%p210_p1)
}
  0x20   :  { %s220_s0 = smov 64   ;;  %s221_s15 = smov 4  }
  0x21   :  { %34 = dma.hbm_to_vmem [thread:$0]  %s299_s1, 256, %s255_s21, [#allocation6], %s220_s0, %s220_s0, %s221_s15  }
  0x22   :  { %214 = dma.done.wait [#allocation4], 128  }
  0x23   :  { %215 = vsyncadd [#allocation4], 4294967168 }
  0x24   :  { %216 = dma.done.wait [#allocation6], 256  }
  0x25   :  { %217 = vsyncadd [#allocation6], 4294967040  ;;  %v222_v0 = vmov 0.0   ;;  %vm223_vm0 = vmmov 0   ;;  %v168_v1 = vld [vmem:[#allocation5] sm:$0xff]   ;;  %v169_v2 = vld [vmem:[#allocation5 + $0x8] sm:$0xff]   ;;  %v116_v5 = vlaneseq  ;;  %v137_v26 = vstv %s302_s4 }
  0x26   :  { %153 = vmatprep.subr.bf16.mxu0 %v222_v0  ;;  %157 = vmatprep.mubr.msk.bf16.mxu0 %vm223_vm0, %v222_v0  ;;  %v48_v3 = vld [vmem:[#allocation3] sm:$0xff]  ;;  %vm66_vm1 = vcmask 261120   ;;  %v224_v22 = vmov 0   ;;  %vm139_vm2 = vcmask 7168  }
  0x27   :  { %154 = vmatpush3.bf16.msra.mxu0 %v168_v1  ;;  %v49_v4 = vpack.c.bf16 %v48_v3, %v48_v3  ;;  %v111_v6 = vld [vmem:[%s300_s2] sm:$0x1]  ;;  %v117_v8 = vshrl.u32 %v116_v5, 7 }
  0x28   :  { %155 = vmatprep.subr.bf16.mxu0 %v222_v0  ;;  %v112_v7 = vpack.c.bf16 %v111_v6, %v111_v6  ;;  %v122_v9 = vld [vmem:[%s301_s3] sm:$0x1] }
  0x29   :  { %v118_v11 = vsub.s32 0, %v117_v8  ;;  %v123_v12 = vpack.c.bf16 %v122_v9, %v122_v9 }
  0x2a   :  { %v114_v10 = vpack.i.b16 %v112_v7, %v112_v7 }
  0x2b   :  { %156 = vmatpush3.bf16.msra.mxu0 %v169_v2  ;;  %v125_v14 = vpack.i.b16 %v123_v12, %v123_v12 }
  0x2c   :  { %v119_v13 = vrot.slane %v114_v10, %v118_v11 }
  0x2d   :  { %v130_v21 = vrot.slane %v125_v14, %v118_v11 }
  0x2e   :  { %158 = vmatmul.mubr.msk.bf16.vlgmr.msra.gmra.mrb[0].mxu0 %vm66_vm1, %v49_v4 }
 0x101   :  { %v104_v15 = vpop.f32.mrb[0].mxu0 }
 0x102   :  { %v110_v16 = vpack.c.bf16 %v104_v15, %v104_v15  ;;  %v159_v17 = vpop.f32.mrb[1].mxu0 }
 0x103   :  { %v107_v18 = vpop.f32.mrb[2].mxu0 }
 0x104   :  { %v120_v19 = vadd.bf16 %v119_v13, %v110_v16  ;;  %v160_v20 = vpop.f32.mrb[3].mxu0 }
 0x106   :  { %v121_v23 = vmax.bf16 %v224_v22, %v120_v19 }
 0x108   :  { %v131_v24 = vmul.bf16 %v130_v21, %v121_v23 }
 0x10a   :  { %v132_v25 = vunpack.c.l.bf16 %v131_v24 }
 0x10c   :  { %133 = vadd.xlane.f32.xlu0 %v132_v25 }
 0x199   :  { %v134_v27 = vpop.xlane.xlu0 %133 }
 0x19a   :  { %v138_v28 = vadd.f32 %v137_v26, %v134_v27 }
 0x19c   :  { %140 = vst.msk [vmem:[%s303_s5] sm:$0xff] %vm139_vm2, %v138_v28 }
 0x19d   :  { %145 = vsyncpa [#allocation4], 1 }
 0x19e   :  { %146 = vsyncpa [#allocation6], 1 }

</bundles_post_ra>
